<compile_context>
chip_gen: v5e
topology: v5e:2x2
jax: 0.10.0
libtpu: 0.0.40
codegen_flags: <defaults>
</compile_context>

<pallas_src>
import jax
import jax.numpy as jnp
from jax.experimental import pallas as pl
from jax.experimental.pallas import tpu as pltpu

IN_FEATURES = 2 * 15 * 15   # 450
OUT_CLASSES = 8
H_PAD = 512                 # fc1 hidden width padded to a lane-aligned width
C_PAD = 128                 # 8 logits padded to one full lane group
NEG_BIG = -1e30             # "minus infinity" bias for padded class lanes


def net_kernel(x_ref, w1_ref, b1_ref, w2_ref, b2_ref, o_ref):
    # x:  (TB, 450) f32      w1: (450, 512) bf16    b1: (1, 512) f32
    # w2: (512, 128) bf16    b2: (1, 128)  f32 (pad lanes = -1e30)
    # o:  (TB, 8)   f32
    x = x_ref[...].astype(jnp.bfloat16)

    # fc1 on the MXU (bf16 inputs, f32 accumulate) + bias + ReLU in f32.
    h = jnp.dot(x, w1_ref[...], preferred_element_type=jnp.float32) + b1_ref[...]
    h = jnp.maximum(h, 0.0)

    # fc2 (activations back to bf16 for the MXU, accumulate in f32).
    logits = jnp.dot(h.astype(jnp.bfloat16), w2_ref[...],
                     preferred_element_type=jnp.float32) + b2_ref[...]

    # log_softmax over classes. Padded lanes hold -1e30, so they never win the
    # max and contribute exp(.) == 0 to the sum.
    m = jnp.max(logits, axis=-1, keepdims=True)
    shifted = logits - m
    lse = jnp.log(jnp.sum(jnp.exp(shifted), axis=-1, keepdims=True))
    logp = shifted - lse

    # Only the 8 real class lanes are written back.
    o_ref[...] = logp[:, :OUT_CLASSES]


def _round_up(n, m):
    return ((n + m - 1) // m) * m


def prepare_params(w1, b1, w2, b2):
    """One-off preprocessing of PyTorch-layout params (out, in).

    Transpose, pad to lane-aligned widths and cast weights to bf16. Call this
    ONCE at init/load time and pass the result to net_forward, so the per-call
    path never re-reads / re-pads the weights."""
    w1_p = jnp.zeros((IN_FEATURES, H_PAD), jnp.bfloat16).at[:, :IN_FEATURES].set(
        jnp.asarray(w1, jnp.float32).T.astype(jnp.bfloat16))
    b1_p = jnp.zeros((1, H_PAD), jnp.float32).at[0, :IN_FEATURES].set(
        jnp.asarray(b1, jnp.float32))
    w2_p = jnp.zeros((H_PAD, C_PAD), jnp.bfloat16).at[:IN_FEATURES, :OUT_CLASSES].set(
        jnp.asarray(w2, jnp.float32).T.astype(jnp.bfloat16))
    b2_p = jnp.full((1, C_PAD), NEG_BIG, jnp.float32).at[0, :OUT_CLASSES].set(
        jnp.asarray(b2, jnp.float32))
    return w1_p, b1_p, w2_p, b2_p


@jax.jit
def net_forward(x_nchw, w1_p, b1_p, w2_p, b2_p):
    """x_nchw: (B, 2, 15, 15) float32. Params from prepare_params().
    Returns (B, 8) log-probabilities (float32)."""
    B = x_nchw.shape[0]
    x = x_nchw.reshape(B, IN_FEATURES).astype(jnp.float32)

    # Batch tile: multiple of 8 sublanes, cap 1024 rows. If a single tile
    # would cover the whole batch, split into >=2 so the "parallel" grid axis
    # can shard across both TensorCores on v7x.
    TB = min(1024, _round_up(B, 8))
    if B > 8 and _round_up(B, TB) // TB < 2:
        TB = _round_up((B + 1) // 2, 8)
    B_pad = _round_up(B, TB)
    if B_pad != B:
        x = jnp.pad(x, ((0, B_pad - B), (0, 0)))   # cheap batch-row padding only

    out = pl.pallas_call(
        net_kernel,
        out_shape=jax.ShapeDtypeStruct((B_pad, OUT_CLASSES), jnp.float32),
        grid=(B_pad // TB,),
        in_specs=[
            pl.BlockSpec((TB, IN_FEATURES), lambda i: (i, 0)),      # x tile (f32, unpadded)
            pl.BlockSpec((IN_FEATURES, H_PAD), lambda i: (0, 0)),   # w1 (resident)
            pl.BlockSpec((1, H_PAD), lambda i: (0, 0)),             # b1 (resident)
            pl.BlockSpec((H_PAD, C_PAD), lambda i: (0, 0)),         # w2 (resident)
            pl.BlockSpec((1, C_PAD), lambda i: (0, 0)),             # b2 (resident)
        ],
        out_specs=pl.BlockSpec((TB, OUT_CLASSES), lambda i: (i, 0)),
        compiler_params=pltpu.CompilerParams(
            dimension_semantics=("parallel",)),
    )(x, w1_p, b1_p, w2_p, b2_p)

    return out[:B] if B_pad != B else out


def init_params(key):
    """Deterministic params matching nn.Linear shapes (PyTorch-style uniform
    in (-1/sqrt(fan_in), 1/sqrt(fan_in)))."""
    k1, k2, k3, k4 = jax.random.split(key, 4)
    bound = 1.0 / jnp.sqrt(IN_FEATURES)
    w1 = jax.random.uniform(k1, (IN_FEATURES, IN_FEATURES), jnp.float32,
                            -bound, bound)              # fc1.weight: (out, in)
    b1 = jax.random.uniform(k2, (IN_FEATURES,), jnp.float32, -bound, bound)
    w2 = jax.random.uniform(k3, (OUT_CLASSES, IN_FEATURES), jnp.float32,
                            -bound, bound)              # fc2.weight: (out, in)
    b2 = jax.random.uniform(k4, (OUT_CLASSES,), jnp.float32, -bound, bound)
    return w1, b1, w2, b2


if __name__ == "__main__":
    key = jax.random.PRNGKey(0)
    k_params, k_input = jax.random.split(key)

    w1, b1, w2, b2 = init_params(k_params)
    # One-off weight prep (outside the per-call jitted path).
    w1_p, b1_p, w2_p, b2_p = prepare_params(w1, b1, w2, b2)

    B = 4
    x = jax.random.normal(k_input, (B, 2, 15, 15), dtype=jnp.float32)

    out = jax.block_until_ready(net_forward(x, w1_p, b1_p, w2_p, b2_p))
    assert out.shape == (B, OUT_CLASSES)

    # Reference with the same bf16 input/weight rounding but plain-JAX f32 math.
    xb = x.reshape(B, -1).astype(jnp.bfloat16).astype(jnp.float32)
    w1b = w1.astype(jnp.bfloat16).astype(jnp.float32)
    w2b = w2.astype(jnp.bfloat16).astype(jnp.float32)
    h_ref = jnp.maximum(xb @ w1b.T + b1, 0.0)
    logits_ref = h_ref.astype(jnp.bfloat16).astype(jnp.float32) @ w2b.T + b2
    ref = jax.nn.log_softmax(logits_ref, axis=1)
    assert jnp.allclose(out, ref, atol=5e-3, rtol=5e-3), (
        float(jnp.max(jnp.abs(out - ref))))

    print("KERNEL_OK")
</pallas_src>

<mosaic_0001>
module attributes {stable_mosaic.version = 11 : i64} {
  func.func @net_kernel(%arg0: i32, %arg1: memref<8x450xf32, #tpu.memory_space<vmem>>, %arg2: memref<450x512xbf16, #tpu.memory_space<vmem>>, %arg3: memref<1x512xf32, #tpu.memory_space<vmem>>, %arg4: memref<512x128xbf16, #tpu.memory_space<vmem>>, %arg5: memref<1x128xf32, #tpu.memory_space<vmem>>, %arg6: memref<8x8xf32, #tpu.memory_space<vmem>>) attributes {dimension_semantics = [#tpu.dimension_semantics<parallel>], iteration_bounds = array<i64: 1>, scalar_prefetch = 0 : i64, scratch_operands = 0 : i64, tpu.core_type = #tpu.core_type<tc>, window_params = [{transform_indices = @transform_0, window_bounds = array<i64: 8, 450>}, {pipeline_mode = #tpu.pipeline_mode<synchronous>, transform_indices = @transform_1, window_bounds = array<i64: 450, 512>}, {pipeline_mode = #tpu.pipeline_mode<synchronous>, transform_indices = @transform_2, window_bounds = array<i64: 1, 512>}, {pipeline_mode = #tpu.pipeline_mode<synchronous>, transform_indices = @transform_3, window_bounds = array<i64: 512, 128>}, {pipeline_mode = #tpu.pipeline_mode<synchronous>, transform_indices = @transform_4, window_bounds = array<i64: 1, 128>}, {transform_indices = @transform_5, window_bounds = array<i64: 8, 8>}]} {
    %c0 = arith.constant 0 : index
    %c0_0 = arith.constant 0 : index
    %0 = vector.load %arg1[%c0, %c0_0] : memref<8x450xf32, #tpu.memory_space<vmem>>, vector<8x450xf32>
    %1 = arith.truncf %0 : vector<8x450xf32> to vector<8x450xbf16>
    %c0_1 = arith.constant 0 : index
    %c0_2 = arith.constant 0 : index
    %2 = vector.load %arg2[%c0_1, %c0_2] : memref<450x512xbf16, #tpu.memory_space<vmem>>, vector<450x512xbf16>
    %cst = arith.constant dense<0.000000e+00> : vector<8x512xf32>
    %3 = tpu.matmul %1, %2, %cst {dimension_numbers = #tpu.dot_dimension_numbers<[1], [0], [0], [1], [0, 0, 1, 1], [], []>} : vector<8x450xbf16>, vector<450x512xbf16>, vector<8x512xf32> -> vector<8x512xf32>
    %c0_3 = arith.constant 0 : index
    %c0_4 = arith.constant 0 : index
    %4 = vector.load %arg3[%c0_3, %c0_4] : memref<1x512xf32, #tpu.memory_space<vmem>>, vector<1x512xf32>
    %5 = vector.broadcast %4 : vector<1x512xf32> to vector<8x512xf32>
    %6 = arith.addf %3, %5 : vector<8x512xf32>
    %cst_5 = arith.constant 0.000000e+00 : f32
    %7 = vector.broadcast %cst_5 : f32 to vector<8x512xf32>
    %8 = arith.maximumf %6, %7 : vector<8x512xf32>
    %9 = arith.truncf %8 : vector<8x512xf32> to vector<8x512xbf16>
    %c0_6 = arith.constant 0 : index
    %c0_7 = arith.constant 0 : index
    %10 = vector.load %arg4[%c0_6, %c0_7] : memref<512x128xbf16, #tpu.memory_space<vmem>>, vector<512x128xbf16>
    %cst_8 = arith.constant dense<0.000000e+00> : vector<8x128xf32>
    %11 = tpu.matmul %9, %10, %cst_8 {dimension_numbers = #tpu.dot_dimension_numbers<[1], [0], [0], [1], [0, 0, 1, 1], [], []>} : vector<8x512xbf16>, vector<512x128xbf16>, vector<8x128xf32> -> vector<8x128xf32>
    %c0_9 = arith.constant 0 : index
    %c0_10 = arith.constant 0 : index
    %12 = vector.load %arg5[%c0_9, %c0_10] : memref<1x128xf32, #tpu.memory_space<vmem>>, vector<1x128xf32>
    %13 = vector.broadcast %12 : vector<1x128xf32> to vector<8x128xf32>
    %14 = arith.addf %11, %13 : vector<8x128xf32>
    %cst_11 = arith.constant dense<0xFF800000> : vector<8xf32>
    %15 = vector.multi_reduction <maximumf>, %14, %cst_11 [1] : vector<8x128xf32> to vector<8xf32>
    %16 = vector.shape_cast %15 : vector<8xf32> to vector<8x1xf32>
    %17 = vector.broadcast %16 : vector<8x1xf32> to vector<8x128xf32>
    %18 = arith.subf %14, %17 : vector<8x128xf32>
    %19 = math.exp %18 : vector<8x128xf32>
    %cst_12 = arith.constant dense<0.000000e+00> : vector<8xf32>
    %20 = vector.multi_reduction <add>, %19, %cst_12 [1] : vector<8x128xf32> to vector<8xf32>
    %21 = vector.shape_cast %20 : vector<8xf32> to vector<8x1xf32>
    %22 = math.log %21 : vector<8x1xf32>
    %23 = vector.broadcast %22 : vector<8x1xf32> to vector<8x128xf32>
    %24 = arith.subf %18, %23 : vector<8x128xf32>
    %25 = vector.extract_strided_slice %24 {offsets = [0, 0], sizes = [8, 8], strides = [1, 1]} : vector<8x128xf32> to vector<8x8xf32>
    %c0_13 = arith.constant 0 : index
    %c0_14 = arith.constant 0 : index
    %26 = vector.load %arg6[%c0_13, %c0_14] : memref<8x8xf32, #tpu.memory_space<vmem>>, vector<8x8xf32>
    tpu.vector_store %arg6[%c0_13, %c0_14], %25 {strides = array<i32>} : memref<8x8xf32, #tpu.memory_space<vmem>>, vector<8x8xf32>,
    return
  }
  func.func @transform_0(%arg0: i32) -> (i32, i32) {
    %c0_i32 = arith.constant 0 : i32
    %c0_i32_0 = arith.constant 0 : i32
    return %arg0, %c0_i32 : i32, i32
  }
  func.func @transform_1(%arg0: i32) -> (i32, i32) {
    %c0_i32 = arith.constant 0 : i32
    %c0_i32_0 = arith.constant 0 : i32
    %c0_i32_1 = arith.constant 0 : i32
    return %c0_i32, %c0_i32_0 : i32, i32
  }
  func.func @transform_2(%arg0: i32) -> (i32, i32) {
    %c0_i32 = arith.constant 0 : i32
    %c0_i32_0 = arith.constant 0 : i32
    %c0_i32_1 = arith.constant 0 : i32
    return %c0_i32, %c0_i32_0 : i32, i32
  }
  func.func @transform_3(%arg0: i32) -> (i32, i32) {
    %c0_i32 = arith.constant 0 : i32
    %c0_i32_0 = arith.constant 0 : i32
    %c0_i32_1 = arith.constant 0 : i32
    return %c0_i32, %c0_i32_0 : i32, i32
  }
  func.func @transform_4(%arg0: i32) -> (i32, i32) {
    %c0_i32 = arith.constant 0 : i32
    %c0_i32_0 = arith.constant 0 : i32
    %c0_i32_1 = arith.constant 0 : i32
    return %c0_i32, %c0_i32_0 : i32, i32
  }
  func.func @transform_5(%arg0: i32) -> (i32, i32) {
    %c0_i32 = arith.constant 0 : i32
    %c0_i32_0 = arith.constant 0 : i32
    return %arg0, %c0_i32 : i32, i32
  }
}

</mosaic_0001>

<bundles_post_ra>
// kernel: net_forward.1
= control target key start
LH: loop header
LB: loop body
LE: loop exit
PB: predicated region body
PF: predicated region fallthrough
CT: control target
= control target key end

     0   :  { %10 = vsyncpa [#allocation3], 0  ;;  %s2059_s21 = smov [#allocation2]   ;;  %s2060_s23 = smov 256   ;;  %s2258_s0 = inlined_call_operand.vmem [shape: f32[8,450], index: 0, kind: input, shape index: {}]   ;;  %s2259_s1 = inlined_call_operand.hbm [shape: bf16[450,512], index: 1, kind: input, shape index: {}]   ;;  %s2260_s2 = inlined_call_operand.vmem [shape: f32[1,512], index: 2, kind: input, shape index: {}]   ;;  %s2261_s3 = inlined_call_operand.vmem [shape: bf16[512,128], index: 3, kind: input, shape index: {}]   ;;  %s2262_s4 = inlined_call_operand.vmem [shape: f32[1,128], index: 4, kind: input, shape index: {}]   ;;  %s2263_s5 = inlined_call_operand.vmem [shape: f32[8,8], index: 5, kind: output, shape index: {}]  }
   0x1   :  { %s17_s20 = sshll.u32 %s2259_s1, 4  ;;  %s19_s22 = sshll.u32 %s2059_s21, 4  ;;  %s18_s20 = int_to_ptr.hbm [resolvable:$true] %s17_s20  ;;  %s20_s22 = int_to_ptr.vmem [resolvable:$true] %s19_s22 }
   0x2   :  { %s2061_s24 = smov 16  }
   0x3   :  { %25 = dma.hbm_to_vmem [thread:$0]  %s18_s20, 14592, %s20_s22, [#allocation3], %s2060_s23, %s2060_s23, %s2061_s24  }
   0x4   :  { %2057 = dma.done.wait [#allocation3], 14592  }
   0x5   :  { %2058 = vsyncadd [#allocation3], 4294952704  ;;  %vm743_vm0 = vcmask 1040384   ;;  %v1415_v0 = vld [vmem:[#allocation2 + $0xe0] sm:$0xf]  ;;  %vm739_vm1 = vcmask 539648  }
   0x6   :  { %v1911_v1 = vld [vmem:[#allocation2 + $0xec] sm:$0xf0]  ;;  %v1543_v2 = vld [vmem:[#allocation2 + $0x1e0] sm:$0xf]  ;;  %vm1294_vm2 = vcmask 64512  }
   0x7   :  { %v1416_v3 = vor.u32 %v1911_v1, %v1415_v0  ;;  %v1943_v4 = vld [vmem:[#allocation2 + $0x1ec] sm:$0xf0]  ;;  %v1671_v5 = vld [vmem:[#allocation2 + $0x2e0] sm:$0xf] }
   0x8   :  { %v1975_v6 = vld [vmem:[#allocation2 + $0x2ec] sm:$0xf0]  ;;  %v1544_v7 = vor.u32 %v1943_v4, %v1543_v2  ;;  %v2095_v9 = vld [vmem:[#allocation2 + $0x380] sm:$0x11] }
   0x9   :  { %v1672_v8 = vor.u32 %v1975_v6, %v1671_v5  ;;  %v1399_v10 = vld [vmem:[#allocation2 + $0xc0] sm:$0xf]  ;;  %v1907_v11 = vld [vmem:[#allocation2 + $0xcc] sm:$0xf0]  ;;  %756 = vmatpush.bf16.msra.mxu0 %v1416_v3  ;;  %v507_v12 = vunpack.c.l.b16 %v2095_v9  ;;  %v1909_v2 = vld [vmem:[#allocation2 + $0xe4] sm:$0xf] }
   0xa   :  { %v1400_v13 = vor.u32 %v1907_v11, %v1399_v10  ;;  %v1527_v14 = vld [vmem:[#allocation2 + $0x1c0] sm:$0xf]  ;;  %v1939_v15 = vld [vmem:[#allocation2 + $0x1cc] sm:$0xf0]  ;;  %769 = vmatpush.bf16.msra.mxu1 %v1544_v7  ;;  %v1417_v3 = vld [vmem:[#allocation2 + $0xf0] sm:$0xf0] }
   0xb   :  { %v1655_v16 = vld [vmem:[#allocation2 + $0x2c0] sm:$0xf]  ;;  %782 = vmatpush.bf16.msra.mxu2 %v1672_v8  ;;  %v1528_v17 = vor.u32 %v1939_v15, %v1527_v14  ;;  %v1971_v18 = vld [vmem:[#allocation2 + $0x2cc] sm:$0xf0]  ;;  %v623_v21 = vpack.c.b16 %v507_v12, %v507_v12  ;;  %v1420_v11 = vor.u32 %v1909_v2, %v1417_v3  ;;  %v1965_v2 = vld [vmem:[#allocation2 + $0x2a4] sm:$0xf] }
   0xc   :  { %v1735_v19 = vld [vmem:[#allocation2 + $0x360] sm:$0xf]  ;;  %v1991_v20 = vld [vmem:[#allocation2 + $0x36c] sm:$0xf0]  ;;  %v1656_v22 = vor.u32 %v1971_v18, %v1655_v16  ;;  %v1905_v16 = vld [vmem:[#allocation2 + $0xc4] sm:$0xf] }
   0xd   :  { %v1383_v23 = vld [vmem:[#allocation2 + $0xa0] sm:$0xf]  ;;  %v1903_v24 = vld [vmem:[#allocation2 + $0xac] sm:$0xf0]  ;;  %v745_v29 = vsel %vm743_vm0, %v623_v21, 0  ;;  %757 = vmatpush.bf16.msra.mxu0 %v1400_v13  ;;  %v1736_v31 = vor.u32 %v1991_v20, %v1735_v19  ;;  %v508_v21 = vunpack.c.h.b16 %v2095_v9 }
   0xe   :  { %v1511_v25 = vld [vmem:[#allocation2 + $0x1a0] sm:$0xf]  ;;  %v1935_v26 = vld [vmem:[#allocation2 + $0x1ac] sm:$0xf0]  ;;  %v1384_v30 = vor.u32 %v1903_v24, %v1383_v23  ;;  %798 = vmatpush.bf16.msra.mxu3 %v745_v29  ;;  %770 = vmatpush.bf16.msra.mxu1 %v1528_v17  ;;  %v1401_v17 = vld [vmem:[#allocation2 + $0xd0] sm:$0xf0] }
   0xf   :  { %v1639_v27 = vld [vmem:[#allocation2 + $0x2a0] sm:$0xf]  ;;  %v1967_v28 = vld [vmem:[#allocation2 + $0x2ac] sm:$0xf0]  ;;  %v1512_v32 = vor.u32 %v1935_v26, %v1511_v25  ;;  %783 = vmatpush.bf16.msra.mxu2 %v1656_v22  ;;  %v1545_v29 = vld [vmem:[#allocation2 + $0x1f0] sm:$0xf0] }
  0x10   :  { %v1719_v33 = vld [vmem:[#allocation2 + $0x340] sm:$0xf]  ;;  %v1899_v35 = vld [vmem:[#allocation2 + $0x8c] sm:$0xf0]  ;;  %v1640_v36 = vor.u32 %v1967_v28, %v1639_v27  ;;  %v1404_v27 = vor.u32 %v1905_v16, %v1401_v17  ;;  %v1941_v28 = vld [vmem:[#allocation2 + $0x1e4] sm:$0xf] }
  0x11   :  { %v1367_v34 = vld [vmem:[#allocation2 + $0x80] sm:$0xf]  ;;  %v1987_v37 = vld [vmem:[#allocation2 + $0x34c] sm:$0xf0]  ;;  %758 = vmatpush.bf16.msra.mxu0 %v1384_v30  ;;  %v40_v30 = vld [vmem:[%s2258_s0 + $0x18] sm:$0xff] }
  0x12   :  { %v1495_v38 = vld [vmem:[#allocation2 + $0x180] sm:$0xf]  ;;  %v1931_v39 = vld [vmem:[#allocation2 + $0x18c] sm:$0xf0]  ;;  %v1368_v42 = vor.u32 %v1899_v35, %v1367_v34  ;;  %799 = vmatpush.bf16.msra.mxu3 %v1736_v31  ;;  %771 = vmatpush.bf16.msra.mxu1 %v1512_v32  ;;  %v1720_v43 = vor.u32 %v1987_v37, %v1719_v33  ;;  %v1901_v32 = vld [vmem:[#allocation2 + $0xa4] sm:$0xf]  ;;  %v2103_v33 = vpack.c.bf16 %v40_v30, %v40_v30 }
  0x13   :  { %v1623_v40 = vld [vmem:[#allocation2 + $0x280] sm:$0xf]  ;;  %v1963_v41 = vld [vmem:[#allocation2 + $0x28c] sm:$0xf0]  ;;  %v1496_v44 = vor.u32 %v1931_v39, %v1495_v38  ;;  %784 = vmatpush.bf16.msra.mxu2 %v1640_v36  ;;  %v1385_v9 = vld [vmem:[#allocation2 + $0xb0] sm:$0xf0]  ;;  %v624_v37 = vpack.c.b16 %v508_v21, %v508_v21  ;;  %v1548_v39 = vor.u32 %v1941_v28, %v1545_v29 }
  0x14   :  { %v1703_v45 = vld [vmem:[#allocation2 + $0x320] sm:$0xf]  ;;  %v1895_v47 = vld [vmem:[#allocation2 + $0x6c] sm:$0xf0]  ;;  %v1624_v48 = vor.u32 %v1963_v41, %v1623_v40  ;;  %v1973_v35 = vld [vmem:[#allocation2 + $0x2e4] sm:$0xf] }
  0x15   :  { %v1351_v46 = vld [vmem:[#allocation2 + $0x60] sm:$0xf]  ;;  %v1983_v49 = vld [vmem:[#allocation2 + $0x32c] sm:$0xf0]  ;;  %759 = vmatpush.bf16.msra.mxu0 %v1368_v42  ;;  %v1673_v36 = vld [vmem:[#allocation2 + $0x2f0] sm:$0xf0] }
  0x16   :  { %v1479_v50 = vld [vmem:[#allocation2 + $0x160] sm:$0xf]  ;;  %v1927_v51 = vld [vmem:[#allocation2 + $0x16c] sm:$0xf0]  ;;  %v1352_v54 = vor.u32 %v1895_v47, %v1351_v46  ;;  %800 = vmatpush.bf16.msra.mxu3 %v1720_v43  ;;  %772 = vmatpush.bf16.msra.mxu1 %v1496_v44  ;;  %v1704_v56 = vor.u32 %v1983_v49, %v1703_v45  ;;  %v1897_v40 = vld [vmem:[#allocation2 + $0x84] sm:$0xf]  ;;  %v1388_v43 = vor.u32 %v1901_v32, %v1385_v9 }
  0x17   :  { %v1607_v52 = vld [vmem:[#allocation2 + $0x260] sm:$0xf]  ;;  %v1959_v53 = vld [vmem:[#allocation2 + $0x26c] sm:$0xf0]  ;;  %v1480_v57 = vor.u32 %v1927_v51, %v1479_v50  ;;  %785 = vmatpush.bf16.msra.mxu2 %v1624_v48  ;;  %v1937_v41 = vld [vmem:[#allocation2 + $0x1c4] sm:$0xf]  ;;  %v1676_v47 = vor.u32 %v1973_v35, %v1673_v36 }
  0x18   :  { %v1687_v55 = vld [vmem:[#allocation2 + $0x300] sm:$0xf]  ;;  %v1979_v58 = vld [vmem:[#allocation2 + $0x30c] sm:$0xf0]  ;;  %v1608_v61 = vor.u32 %v1959_v53, %v1607_v52  ;;  %v1529_v44 = vld [vmem:[#allocation2 + $0x1d0] sm:$0xf0] }
  0x19   :  { %v1335_v59 = vld [vmem:[#allocation2 + $0x40] sm:$0xf]  ;;  %v1891_v60 = vld [vmem:[#allocation2 + $0x4c] sm:$0xf0]  ;;  %760 = vmatpush.bf16.msra.mxu0 %v1352_v54  ;;  %v1688_v5 = vor.u32 %v1979_v58, %v1687_v55  ;;  %v1369_v48 = vld [vmem:[#allocation2 + $0x90] sm:$0xf0] }
  0x1a   :  { %v1463_v62 = vld [vmem:[#allocation2 + $0x140] sm:$0xf]  ;;  %v1923_v63 = vld [vmem:[#allocation2 + $0x14c] sm:$0xf0]  ;;  %v1336_v4 = vor.u32 %v1891_v60, %v1335_v59  ;;  %801 = vmatpush.bf16.msra.mxu3 %v1704_v56  ;;  %773 = vmatpush.bf16.msra.mxu1 %v1480_v57  ;;  %v1969_v49 = vld [vmem:[#allocation2 + $0x2c4] sm:$0xf]  ;;  %v1532_v56 = vor.u32 %v1937_v41, %v1529_v44  ;;  %v1372_v59 = vor.u32 %v1897_v40, %v1369_v48 }
  0x1b   :  { %v1591_v0 = vld [vmem:[#allocation2 + $0x240] sm:$0xf]  ;;  %v1955_v1 = vld [vmem:[#allocation2 + $0x24c] sm:$0xf0]  ;;  %v1464_v6 = vor.u32 %v1923_v63, %v1463_v62  ;;  %786 = vmatpush.bf16.msra.mxu2 %v1608_v61  ;;  %v1657_v50 = vld [vmem:[#allocation2 + $0x2d0] sm:$0xf0] }
  0x1c   :  { %v1319_v7 = vld [vmem:[#allocation2 + $0x20] sm:$0xf]  ;;  %v1887_v8 = vld [vmem:[#allocation2 + $0x2c] sm:$0xf0]  ;;  %v1592_v10 = vor.u32 %v1955_v1, %v1591_v0  ;;  %v748_v51 = vsel %vm743_vm0, %v624_v37, 0  ;;  %v38_v55 = vld [vmem:[%s2258_s0 + $0x8] sm:$0xff]  ;;  %v1660_v62 = vor.u32 %v1969_v49, %v1657_v50 }
  0x1d   :  { %v1447_v12 = vld [vmem:[#allocation2 + $0x120] sm:$0xf]  ;;  %v1919_v13 = vld [vmem:[#allocation2 + $0x12c] sm:$0xf0]  ;;  %761 = vmatpush.bf16.msra.mxu0 %v1336_v4  ;;  %v1320_v18 = vor.u32 %v1887_v8, %v1319_v7  ;;  %v1989_v52 = vld [vmem:[#allocation2 + $0x364] sm:$0xf]  ;;  %v2121_v58 = vpack.c.bf16 %v38_v55, %v38_v55 }
  0x1e   :  { %v1575_v14 = vld [vmem:[#allocation2 + $0x220] sm:$0xf]  ;;  %v1951_v15 = vld [vmem:[#allocation2 + $0x22c] sm:$0xf0]  ;;  %802 = vmatpush.bf16.msra.mxu3 %v1688_v5  ;;  %774 = vmatpush.bf16.msra.mxu1 %v1464_v6  ;;  %v1448_v22 = vor.u32 %v1919_v13, %v1447_v12  ;;  %v1737_v53 = vld [vmem:[#allocation2 + $0x370] sm:$0xf0] }
  0x1f   :  { %v1303_v19 = vld [vmem:[#allocation2] sm:$0xf]  ;;  %v1883_v20 = vld [vmem:[#allocation2 + $0xc] sm:$0xf0]  ;;  %787 = vmatpush.bf16.msra.mxu2 %v1592_v10  ;;  %v1576_v26 = vor.u32 %v1951_v15, %v1575_v14  ;;  %v1933_v60 = vld [vmem:[#allocation2 + $0x1a4] sm:$0xf]  ;;  %v1740_v63 = vor.u32 %v1989_v52, %v1737_v53 }
  0x20   :  { %v1431_v23 = vld [vmem:[#allocation2 + $0x100] sm:$0xf]  ;;  %v1915_v24 = vld [vmem:[#allocation2 + $0x10c] sm:$0xf0]  ;;  %v1304_v34 = vor.u32 %v1883_v20, %v1303_v19  ;;  %v1513_v61 = vld [vmem:[#allocation2 + $0x1b0] sm:$0xf0] }
  0x21   :  { %v1559_v25 = vld [vmem:[#allocation2 + $0x200] sm:$0xf]  ;;  %v1947_v31 = vld [vmem:[#allocation2 + $0x20c] sm:$0xf0]  ;;  %762 = vmatpush.bf16.msra.mxu0 %v1320_v18  ;;  %v1432_v38 = vor.u32 %v1915_v24, %v1431_v23  ;;  %1749 = vmatmul.msk.bf16.vlgmr.msra.gmra.mxu3 %vm739_vm1, %v2103_v33  ;;  %v1893_v0 = vld [vmem:[#allocation2 + $0x64] sm:$0xf]  ;;  %v1516_v6 = vor.u32 %v1933_v60, %v1513_v61 }
  0x22   :  { %808 = vmatpush.bf16.msrb.mxu3 %v1420_v11  ;;  %775 = vmatpush.bf16.msra.mxu1 %v1448_v22  ;;  %v1560_v42 = vor.u32 %v1947_v31, %v1559_v25  ;;  %v39_v45 = vld [vmem:[%s2258_s0 + $0x10] sm:$0xff]  ;;  %v37_v46 = vld [vmem:[%s2258_s0] sm:$0xff]  ;;  %v1423_v32 = vld [vmem:[#allocation2 + $0xe8] sm:$0xf] }
  0x23   :  { %788 = vmatpush.bf16.msra.mxu2 %v1576_v26  ;;  %v2114_v54 = vpack.c.bf16 %v37_v46, %v37_v46  ;;  %v2119_v57 = vpack.c.bf16 %v39_v45, %v39_v45  ;;  %v1353_v1 = vld [vmem:[#allocation2 + $0x70] sm:$0xf0]  ;;  %v1985_v4 = vld [vmem:[#allocation2 + $0x344] sm:$0xf]  ;;  %v1912_v9 = vld [vmem:[#allocation2 + $0xf4] sm:$0xf0] }
  0x24   :  { %v1641_v3 = vld [vmem:[#allocation2 + $0x2b0] sm:$0xf0]  ;;  %v1356_v7 = vor.u32 %v1893_v0, %v1353_v1  ;;  %v1929_v8 = vld [vmem:[#allocation2 + $0x184] sm:$0xf]  ;;  %v1551_v44 = vld [vmem:[#allocation2 + $0x1e8] sm:$0xf] }
  0x25   :  { %763 = vmatpush.bf16.msra.mxu0 %v1304_v34  ;;  %v1721_v5 = vld [vmem:[#allocation2 + $0x350] sm:$0xf0]  ;;  %v1644_v11 = vor.u32 %v1965_v2, %v1641_v3  ;;  %v1889_v13 = vld [vmem:[#allocation2 + $0x44] sm:$0xf]  ;;  %v1944_v45 = vld [vmem:[#allocation2 + $0x1f4] sm:$0xf0] }
  0x26   :  { %809 = vmatpush.bf16.msrb.mxu3 %v1404_v27  ;;  %776 = vmatpush.bf16.msra.mxu1 %v1432_v38  ;;  %v1497_v10 = vld [vmem:[#allocation2 + $0x190] sm:$0xf0]  ;;  %v1724_v12 = vor.u32 %v1985_v4, %v1721_v5  ;;  %v1961_v15 = vld [vmem:[#allocation2 + $0x284] sm:$0xf]  ;;  %v1908_v48 = vld [vmem:[#allocation2 + $0xd4] sm:$0xf0]  ;;  %v1552_v55 = vor.u32 %v1944_v45, %v1551_v44 }
  0x27   :  { %789 = vmatpush.bf16.msra.mxu2 %v1560_v42  ;;  %v1337_v14 = vld [vmem:[#allocation2 + $0x50] sm:$0xf0]  ;;  %v1981_v17 = vld [vmem:[#allocation2 + $0x324] sm:$0xf]  ;;  %v1500_v19 = vor.u32 %v1929_v8, %v1497_v10  ;;  %v1424_v42 = vor.u32 %v1912_v9, %v1423_v32  ;;  %v2126_v52 = vld [vmem:[#allocation2 + $0x388] sm:$0x11] }
  0x28   :  { %764 = vmatmul.bf16.vlgmr.msra.gmra.mxu0 %v2114_v54  ;;  %v1625_v16 = vld [vmem:[#allocation2 + $0x290] sm:$0xf0]  ;;  %v1340_v20 = vor.u32 %v1889_v13, %v1337_v14  ;;  %v1925_v21 = vld [vmem:[#allocation2 + $0x164] sm:$0xf]  ;;  %v1535_v61 = vld [vmem:[#allocation2 + $0x1c8] sm:$0xf]  ;;  %v509_v2 = vunpack.c.l.b16 %v2126_v52 }
  0x29   :  { %821 = vmatpush.bf16.msrb.mxu0 %v1548_v39  ;;  %777 = vmatmul.bf16.vlgmr.msra.gmra.mxu1 %v2121_v58  ;;  %v1705_v18 = vld [vmem:[#allocation2 + $0x330] sm:$0xf0]  ;;  %v1628_v23 = vor.u32 %v1961_v15, %v1625_v16  ;;  %v1885_v25 = vld [vmem:[#allocation2 + $0x24] sm:$0xf]  ;;  %v1391_v0 = vld [vmem:[#allocation2 + $0xa8] sm:$0xf] }
  0x2a   :  { %810 = vmatpush.bf16.msrb.mxu3 %v1388_v43  ;;  %834 = vmatpush.bf16.msrb.mxu1 %v1676_v47  ;;  %v1481_v22 = vld [vmem:[#allocation2 + $0x170] sm:$0xf0]  ;;  %v1708_v24 = vor.u32 %v1981_v17, %v1705_v18  ;;  %v1957_v27 = vld [vmem:[#allocation2 + $0x264] sm:$0xf]  ;;  %v1407_v47 = vld [vmem:[#allocation2 + $0xc8] sm:$0xf]  ;;  %v625_v18 = vpack.c.b16 %v509_v2, %v509_v2 }
  0x2b   :  { %850 = vmatpush.bf16.msrb.mxu2 %v748_v51  ;;  %v1321_v26 = vld [vmem:[#allocation2 + $0x30] sm:$0xf0]  ;;  %v1977_v29 = vld [vmem:[#allocation2 + $0x304] sm:$0xf]  ;;  %v1484_v31 = vor.u32 %v1925_v21, %v1481_v22  ;;  %v1904_v1 = vld [vmem:[#allocation2 + $0xb4] sm:$0xf0] }
  0x2c   :  { %790 = vmatmul.bf16.vlgmr.msra.gmra.mxu2 %v2119_v57  ;;  %v1609_v28 = vld [vmem:[#allocation2 + $0x270] sm:$0xf0]  ;;  %v1324_v34 = vor.u32 %v1885_v25, %v1321_v26  ;;  %v1921_v35 = vld [vmem:[#allocation2 + $0x144] sm:$0xf]  ;;  %v1679_v8 = vld [vmem:[#allocation2 + $0x2e8] sm:$0xf] }
  0x2d   :  { %822 = vmatpush.bf16.msrb.mxu0 %v1532_v56  ;;  %v1689_v30 = vld [vmem:[#allocation2 + $0x310] sm:$0xf0]  ;;  %v1612_v37 = vor.u32 %v1957_v27, %v1609_v28  ;;  %v1881_v39 = vld [vmem:[#allocation2 + $0x4] sm:$0xf]  ;;  %v1976_v10 = vld [vmem:[#allocation2 + $0x2f4] sm:$0xf0] }
  0x2e   :  { %811 = vmatpush.bf16.msrb.mxu3 %v1372_v59  ;;  %835 = vmatpush.bf16.msrb.mxu1 %v1660_v62  ;;  %v1465_v36 = vld [vmem:[#allocation2 + $0x150] sm:$0xf0]  ;;  %v1692_v38 = vor.u32 %v1977_v29, %v1689_v30  ;;  %v1953_v41 = vld [vmem:[#allocation2 + $0x244] sm:$0xf]  ;;  %v1408_v59 = vor.u32 %v1908_v48, %v1407_v47  ;;  %v1940_v62 = vld [vmem:[#allocation2 + $0x1d4] sm:$0xf0] }
  0x2f   :  { %851 = vmatpush.bf16.msrb.mxu2 %v1740_v63  ;;  %v1305_v40 = vld [vmem:[#allocation2 + $0x10] sm:$0xf0]  ;;  %v1468_v46 = vor.u32 %v1921_v35, %v1465_v36  ;;  %v1917_v50 = vld [vmem:[#allocation2 + $0x124] sm:$0xf]  ;;  %v1519_v13 = vld [vmem:[#allocation2 + $0x1a8] sm:$0xf] }
  0x30   :  { %v1593_v43 = vld [vmem:[#allocation2 + $0x250] sm:$0xf0]  ;;  %v1308_v49 = vor.u32 %v1881_v39, %v1305_v40  ;;  %v1949_v56 = vld [vmem:[#allocation2 + $0x224] sm:$0xf]  ;;  %v1936_v14 = vld [vmem:[#allocation2 + $0x1b4] sm:$0xf0] }
  0x31   :  { %823 = vmatpush.bf16.msrb.mxu0 %v1516_v6  ;;  %v1449_v51 = vld [vmem:[#allocation2 + $0x130] sm:$0xf0]  ;;  %v1596_v53 = vor.u32 %v1953_v41, %v1593_v43  ;;  %v1913_v3 = vld [vmem:[#allocation2 + $0x104] sm:$0xf]  ;;  %v1536_v6 = vor.u32 %v1940_v62, %v1535_v61  ;;  %v1375_v16 = vld [vmem:[#allocation2 + $0x88] sm:$0xf]  ;;  %v1520_v21 = vor.u32 %v1936_v14, %v1519_v13 }
  0x32   :  { %812 = vmatpush.bf16.msrb.mxu3 %v1356_v7  ;;  %836 = vmatpush.bf16.msrb.mxu1 %v1644_v11  ;;  %v1577_v60 = vld [vmem:[#allocation2 + $0x230] sm:$0xf0]  ;;  %v1452_v63 = vor.u32 %v1917_v50, %v1449_v51  ;;  %v1945_v7 = vld [vmem:[#allocation2 + $0x204] sm:$0xf]  ;;  %v1392_v11 = vor.u32 %v1904_v1, %v1391_v0  ;;  %v1900_v17 = vld [vmem:[#allocation2 + $0x94] sm:$0xf0] }
  0x33   :  { %852 = vmatpush.bf16.msrb.mxu2 %v1724_v12  ;;  %v1433_v4 = vld [vmem:[#allocation2 + $0x110] sm:$0xf0]  ;;  %v1580_v5 = vor.u32 %v1949_v56, %v1577_v60  ;;  %v1503_v22 = vld [vmem:[#allocation2 + $0x188] sm:$0xf]  ;;  %v1376_v25 = vor.u32 %v1900_v17, %v1375_v16  ;;  %v1932_v26 = vld [vmem:[#allocation2 + $0x194] sm:$0xf0] }
  0x34   :  { %v1561_v12 = vld [vmem:[#allocation2 + $0x210] sm:$0xf0]  ;;  %v1436_v15 = vor.u32 %v1913_v3, %v1433_v4  ;;  %v1359_v27 = vld [vmem:[#allocation2 + $0x68] sm:$0xf]  ;;  %v1896_v28 = vld [vmem:[#allocation2 + $0x74] sm:$0xf0]  ;;  %v1504_v9 = vor.u32 %v1932_v26, %v1503_v22 }
  0x35   :  { %824 = vmatpush.bf16.msrb.mxu0 %v1500_v19  ;;  %v1680_v19 = vor.u32 %v1976_v10, %v1679_v8  ;;  %v751_v29 = vsel %vm743_vm0, %v625_v18, 0  ;;  %v1743_v30 = vld [vmem:[#allocation2 + $0x368] sm:$0xf]  ;;  %v1968_v35 = vld [vmem:[#allocation2 + $0x2b4] sm:$0xf0]  ;;  %v1360_v36 = vor.u32 %v1896_v28, %v1359_v27 }
  0x36   :  { %813 = vmatpush.bf16.msrb.mxu3 %v1340_v20  ;;  %837 = vmatpush.bf16.msrb.mxu1 %v1628_v23  ;;  %v1564_v20 = vor.u32 %v1945_v7, %v1561_v12  ;;  %v1663_v23 = vld [vmem:[#allocation2 + $0x2c8] sm:$0xf]  ;;  %v1928_v39 = vld [vmem:[#allocation2 + $0x174] sm:$0xf0]  ;;  %v1910_v8 = vld [vmem:[#allocation2 + $0xec] sm:$0xf] }
  0x37   :  { %853 = vmatpush.bf16.msrb.mxu2 %v1708_v24  ;;  %v1972_v24 = vld [vmem:[#allocation2 + $0x2d4] sm:$0xf0]  ;;  %v1343_v40 = vld [vmem:[#allocation2 + $0x48] sm:$0xf]  ;;  %v1942_v12 = vld [vmem:[#allocation2 + $0x1ec] sm:$0xf] }
  0x38   :  { %v1664_v32 = vor.u32 %v1972_v24, %v1663_v23  ;;  %v1892_v41 = vld [vmem:[#allocation2 + $0x54] sm:$0xf0]  ;;  %v1471_v50 = vld [vmem:[#allocation2 + $0x148] sm:$0xf]  ;;  %v1553_v13 = vld [vmem:[#allocation2 + $0x1f8] sm:$0xf0] }
  0x39   :  { %825 = vmatpush.bf16.msrb.mxu0 %v1484_v31  ;;  %v1992_v31 = vld [vmem:[#allocation2 + $0x374] sm:$0xf0]  ;;  %v1344_v48 = vor.u32 %v1892_v41, %v1343_v40  ;;  %v1711_v56 = vld [vmem:[#allocation2 + $0x328] sm:$0xf]  ;;  %v1556_v23 = vor.u32 %v1942_v12, %v1553_v13  ;;  %v1681_v24 = vld [vmem:[#allocation2 + $0x2f8] sm:$0xf0] }
  0x3a   :  { %814 = vmatpush.bf16.msrb.mxu3 %v1324_v34  ;;  %838 = vmatpush.bf16.msrb.mxu1 %v1612_v37  ;;  %v1647_v34 = vld [vmem:[#allocation2 + $0x2a8] sm:$0xf]  ;;  %v1744_v37 = vor.u32 %v1992_v31, %v1743_v30  ;;  %v1988_v43 = vld [vmem:[#allocation2 + $0x354] sm:$0xf0]  ;;  %v1409_v26 = vld [vmem:[#allocation2 + $0xd8] sm:$0xf0] }
  0x3b   :  { %854 = vmatpush.bf16.msrb.mxu2 %v1692_v38  ;;  %v1487_v38 = vld [vmem:[#allocation2 + $0x168] sm:$0xf]  ;;  %v1648_v44 = vor.u32 %v1968_v35, %v1647_v34  ;;  %v1964_v47 = vld [vmem:[#allocation2 + $0x294] sm:$0xf0]  ;;  %v1938_v28 = vld [vmem:[#allocation2 + $0x1cc] sm:$0xf]  ;;  %v510_v34 = vunpack.c.h.b16 %v2126_v52 }
  0x3c   :  { %v1488_v45 = vor.u32 %v1928_v39, %v1487_v38  ;;  %v1924_v51 = vld [vmem:[#allocation2 + $0x154] sm:$0xf0]  ;;  %v1455_v62 = vld [vmem:[#allocation2 + $0x128] sm:$0xf]  ;;  %v1665_v38 = vld [vmem:[#allocation2 + $0x2d8] sm:$0xf0] }
  0x3d   :  { %826 = vmatpush.bf16.msrb.mxu0 %v1468_v46  ;;  %v1631_v46 = vld [vmem:[#allocation2 + $0x288] sm:$0xf]  ;;  %v1472_v61 = vor.u32 %v1924_v51, %v1471_v50  ;;  %v1960_v0 = vld [vmem:[#allocation2 + $0x274] sm:$0xf0]  ;;  %v1902_v39 = vld [vmem:[#allocation2 + $0xac] sm:$0xf]  ;;  %v626_v52 = vpack.c.b16 %v510_v34, %v510_v34 }
  0x3e   :  { %815 = vmatpush.bf16.msrb.mxu3 %v1308_v49  ;;  %1750 = vmatmul.msk.bf16.vlgmr.msrb.gmra.mxu2 %vm739_vm1, %v2103_v33  ;;  %v1632_v60 = vor.u32 %v1964_v47, %v1631_v46  ;;  %v1920_v3 = vld [vmem:[#allocation2 + $0x134] sm:$0xf0]  ;;  %v1311_v4 = vld [vmem:[#allocation2 + $0x8] sm:$0xf]  ;;  %v1393_v41 = vld [vmem:[#allocation2 + $0xb8] sm:$0xf0] }
  0x3f   :  { %860 = vmatpush.bf16.msra.mxu2 %v1424_v42  ;;  %839 = vmatpush.bf16.msrb.mxu1 %v1596_v53  ;;  %v1727_v42 = vld [vmem:[#allocation2 + $0x348] sm:$0xf]  ;;  %v1980_v7 = vld [vmem:[#allocation2 + $0x314] sm:$0xf0]  ;;  %v1456_v14 = vor.u32 %v1920_v3, %v1455_v62  ;;  %v1396_v47 = vor.u32 %v1902_v39, %v1393_v41  ;;  %v1649_v50 = vld [vmem:[#allocation2 + $0x2b8] sm:$0xf0] }
  0x40   :  { %v1728_v49 = vor.u32 %v1988_v43, %v1727_v42  ;;  %v1327_v53 = vld [vmem:[#allocation2 + $0x28] sm:$0xf]  ;;  %v1956_v16 = vld [vmem:[#allocation2 + $0x254] sm:$0xf0]  ;;  %v1934_v42 = vld [vmem:[#allocation2 + $0x1ac] sm:$0xf] }
  0x41   :  { %816 = vmatmul.bf16.vlgmr.msrb.gmra.mxu3 %v2114_v54  ;;  %827 = vmatpush.bf16.msrb.mxu0 %v1452_v63  ;;  %v1615_v63 = vld [vmem:[#allocation2 + $0x268] sm:$0xf]  ;;  %v1521_v43 = vld [vmem:[#allocation2 + $0x1b8] sm:$0xf0]  ;;  %v1898_v51 = vld [vmem:[#allocation2 + $0x8c] sm:$0xf] }
  0x42   :  { %873 = vmatpush.bf16.msra.mxu3 %v1552_v55  ;;  %v1888_v55 = vld [vmem:[#allocation2 + $0x34] sm:$0xf0]  ;;  %v1616_v10 = vor.u32 %v1960_v0, %v1615_v63  ;;  %v1583_v31 = vld [vmem:[#allocation2 + $0x228] sm:$0xf]  ;;  %v1990_v62 = vld [vmem:[#allocation2 + $0x36c] sm:$0xf] }
  0x43   :  { %861 = vmatpush.bf16.msra.mxu2 %v1408_v59  ;;  %840 = vmatpush.bf16.msrb.mxu1 %v1580_v5  ;;  %v1984_v59 = vld [vmem:[#allocation2 + $0x334] sm:$0xf0]  ;;  %v1328_v1 = vor.u32 %v1888_v55, %v1327_v53  ;;  %v1377_v55 = vld [vmem:[#allocation2 + $0x98] sm:$0xf0]  ;;  %v1950_v39 = vld [vmem:[#allocation2 + $0x22c] sm:$0xf] }
  0x44   :  { %v1712_v2 = vor.u32 %v1984_v59, %v1711_v56  ;;  %v1884_v5 = vld [vmem:[#allocation2 + $0x14] sm:$0xf0]  ;;  %v1930_v56 = vld [vmem:[#allocation2 + $0x18c] sm:$0xf]  ;;  %v1505_v59 = vld [vmem:[#allocation2 + $0x198] sm:$0xf0]  ;;  %v1380_v0 = vor.u32 %v1898_v51, %v1377_v55 }
  0x45   :  { %828 = vmatpush.bf16.msrb.mxu0 %v1436_v15  ;;  %v1599_v15 = vld [vmem:[#allocation2 + $0x248] sm:$0xf]  ;;  %v1312_v17 = vor.u32 %v1884_v5, %v1311_v4  ;;  %v1745_v63 = vld [vmem:[#allocation2 + $0x378] sm:$0xf0]  ;;  %v1894_v4 = vld [vmem:[#allocation2 + $0x6c] sm:$0xf] }
  0x46   :  { %874 = vmatpush.bf16.msra.mxu3 %v1536_v6  ;;  %v1695_v6 = vld [vmem:[#allocation2 + $0x308] sm:$0xf]  ;;  %v1600_v27 = vor.u32 %v1956_v16, %v1599_v15  ;;  %v1633_v3 = vld [vmem:[#allocation2 + $0x298] sm:$0xf0]  ;;  %v1958_v15 = vld [vmem:[#allocation2 + $0x26c] sm:$0xf] }
  0x47   :  { %862 = vmatpush.bf16.msra.mxu2 %v1392_v11  ;;  %841 = vmatpush.bf16.msrb.mxu1 %v1564_v20  ;;  %v1425_v11 = vld [vmem:[#allocation2 + $0xf8] sm:$0xf0]  ;;  %v1696_v18 = vor.u32 %v1980_v7, %v1695_v6  ;;  %v1916_v20 = vld [vmem:[#allocation2 + $0x114] sm:$0xf0]  ;;  %v1926_v6 = vld [vmem:[#allocation2 + $0x16c] sm:$0xf] }
  0x48   :  { %829 = vmatmul.bf16.vlgmr.msrb.gmra.mxu0 %v2121_v58  ;;  %v1428_v22 = vor.u32 %v1910_v8, %v1425_v11  ;;  %v1361_v5 = vld [vmem:[#allocation2 + $0x78] sm:$0xf0]  ;;  %v1748_v8 = vor.u32 %v1990_v62, %v1745_v63  ;;  %v1986_v11 = vld [vmem:[#allocation2 + $0x34c] sm:$0xf]  ;;  %v1999_v55 = vld [vmem:[%s2261_s3 + $0x30] sm:$0xff] }
  0x49   :  { %886 = vmatpush.bf16.msra.mxu0 %v1680_v19  ;;  %v1439_v19 = vld [vmem:[#allocation2 + $0x108] sm:$0xf]  ;;  %v1489_v7 = vld [vmem:[#allocation2 + $0x178] sm:$0xf0]  ;;  %v1364_v13 = vor.u32 %v1894_v4, %v1361_v5  ;;  %v1882_v41 = vld [vmem:[#allocation2 + $0xc] sm:$0xf] }
  0x4a   :  { %875 = vmatpush.bf16.msra.mxu3 %v1520_v21  ;;  %842 = vmatmul.bf16.vlgmr.msrb.gmra.mxu1 %v2119_v57  ;;  %v1974_v21 = vld [vmem:[#allocation2 + $0x2ec] sm:$0xf]  ;;  %v1440_v30 = vor.u32 %v1916_v20, %v1439_v19  ;;  %v1729_v12 = vld [vmem:[#allocation2 + $0x358] sm:$0xf0]  ;;  %v2005_v62 = vld [vmem:[%s2261_s3 + $0x60] sm:$0xff] }
  0x4b   :  { %863 = vmatpush.bf16.msra.mxu2 %v1376_v25  ;;  %902 = vmatpush.bf16.msra.mxu1 %v751_v29  ;;  %v1906_v25 = vld [vmem:[#allocation2 + $0xcc] sm:$0xf]  ;;  %v1537_v29 = vld [vmem:[#allocation2 + $0x1d8] sm:$0xf0] }
  0x4c   :  { %v1412_v35 = vor.u32 %v1906_v25, %v1409_v26  ;;  %v1617_v16 = vld [vmem:[#allocation2 + $0x278] sm:$0xf0]  ;;  %v1922_v19 = vld [vmem:[#allocation2 + $0x14c] sm:$0xf] }
  0x4d   :  { %887 = vmatpush.bf16.msra.mxu0 %v1664_v32  ;;  %v1952_v32 = vld [vmem:[#allocation2 + $0x234] sm:$0xf0]  ;;  %v1473_v20 = vld [vmem:[#allocation2 + $0x158] sm:$0xf0] }
  0x4e   :  { %876 = vmatpush.bf16.msra.mxu3 %v1504_v9  ;;  %v1684_v9 = vor.u32 %v1974_v21, %v1681_v24  ;;  %v1584_v40 = vor.u32 %v1952_v32, %v1583_v31  ;;  %v1732_v21 = vor.u32 %v1986_v11, %v1729_v12  ;;  %v1713_v24 = vld [vmem:[#allocation2 + $0x338] sm:$0xf0]  ;;  %v1476_v26 = vor.u32 %v1922_v19, %v1473_v20  ;;  %v1918_v31 = vld [vmem:[#allocation2 + $0x12c] sm:$0xf]  ;;  %v2001_v11 = vld [vmem:[%s2261_s3 + $0x40] sm:$0xff] }
  0x4f   :  { %864 = vmatpush.bf16.msra.mxu2 %v1360_v36  ;;  %903 = vmatpush.bf16.msra.mxu1 %v1744_v37  ;;  %v1540_v36 = vor.u32 %v1938_v28, %v1537_v29  ;;  %v1970_v37 = vld [vmem:[#allocation2 + $0x2cc] sm:$0xf]  ;;  %v1601_v28 = vld [vmem:[#allocation2 + $0x258] sm:$0xf0] }
  0x50   :  { %v1668_v46 = vor.u32 %v1970_v37, %v1665_v38  ;;  %v1886_v29 = vld [vmem:[#allocation2 + $0x2c] sm:$0xf]  ;;  %v1457_v32 = vld [vmem:[#allocation2 + $0x138] sm:$0xf0] }
  0x51   :  { %888 = vmatpush.bf16.msra.mxu0 %v1648_v44  ;;  %v1567_v44 = vld [vmem:[#allocation2 + $0x208] sm:$0xf]  ;;  %v1460_v38 = vor.u32 %v1918_v31, %v1457_v32  ;;  %v2008_v51 = vld [vmem:[%s2261_s3 + $0x78] sm:$0xff] }
  0x52   :  { %877 = vmatpush.bf16.msra.mxu3 %v1488_v45  ;;  %v1948_v45 = vld [vmem:[#allocation2 + $0x214] sm:$0xf0]  ;;  %v2014_v19 = vld [vmem:[%s2261_s3 + $0xa8] sm:$0xff] }
  0x53   :  { %865 = vmatpush.bf16.msra.mxu2 %v1344_v48  ;;  %904 = vmatpush.bf16.msra.mxu1 %v1728_v49  ;;  %v1524_v48 = vor.u32 %v1934_v42, %v1521_v43  ;;  %v1966_v49 = vld [vmem:[#allocation2 + $0x2ac] sm:$0xf]  ;;  %v1568_v53 = vor.u32 %v1948_v45, %v1567_v44  ;;  %v1313_v42 = vld [vmem:[#allocation2 + $0x18] sm:$0xf0] }
  0x54   :  { %v1914_v43 = vld [vmem:[#allocation2 + $0x10c] sm:$0xf]  ;;  %v1441_v44 = vld [vmem:[#allocation2 + $0x118] sm:$0xf0] }
  0x55   :  { %889 = vmatpush.bf16.msra.mxu0 %v1632_v60  ;;  %v1652_v60 = vor.u32 %v1966_v49, %v1649_v50  ;;  %v1946_v49 = vld [vmem:[#allocation2 + $0x20c] sm:$0xf]  ;;  %v1569_v50 = vld [vmem:[#allocation2 + $0x218] sm:$0xf0] }
  0x56   :  { %878 = vmatpush.bf16.msra.mxu3 %v1472_v61  ;;  %v754_v61 = vsel %vm743_vm0, %v626_v52, 0  ;;  %v2000_v52 = vld [vmem:[%s2261_s3 + $0x38] sm:$0xff] }
  0x57   :  { %866 = vmatpush.bf16.msra.mxu2 %v1328_v1  ;;  %905 = vmatpush.bf16.msra.mxu1 %v1712_v2  ;;  %v1508_v1 = vor.u32 %v1930_v56, %v1505_v59  ;;  %v1962_v2 = vld [vmem:[#allocation2 + $0x28c] sm:$0xf]  ;;  %v1997_v59 = vld [vmem:[%s2261_s3 + $0x20] sm:$0xff]  ;;  %v2004_v63 = vld [vmem:[%s2261_s3 + $0x58] sm:$0xff] }
  0x58   :  { %v1998_v56 = vld [vmem:[%s2261_s3 + $0x28] sm:$0xff] }
  0x59   :  { %890 = vmatpush.bf16.msra.mxu0 %v1616_v10  ;;  %v1636_v10 = vor.u32 %v1962_v2, %v1633_v3  ;;  %v2003_v2 = vld [vmem:[%s2261_s3 + $0x50] sm:$0xff] }
  0x5a   :  { %879 = vmatpush.bf16.msra.mxu3 %v1456_v14  ;;  %v1492_v14 = vor.u32 %v1926_v6, %v1489_v7  ;;  %v2002_v7 = vld [vmem:[%s2261_s3 + $0x48] sm:$0xff] }
  0x5b   :  { %867 = vmatpush.bf16.msra.mxu2 %v1312_v17  ;;  %906 = vmatpush.bf16.msra.mxu1 %v1696_v18  ;;  %v1890_v17 = vld [vmem:[#allocation2 + $0x4c] sm:$0xf]  ;;  %v1345_v18 = vld [vmem:[#allocation2 + $0x58] sm:$0xf0] }
  0x5c   :  { %v1348_v25 = vor.u32 %v1890_v17, %v1345_v18  ;;  %v2015_v17 = vld [vmem:[%s2261_s3 + $0xb0] sm:$0xff] }
  0x5d   :  { %891 = vmatpush.bf16.msra.mxu0 %v1600_v27  ;;  %v1954_v27 = vld [vmem:[#allocation2 + $0x24c] sm:$0xf] }
  0x5e   :  { %880 = vmatpush.bf16.msra.mxu3 %v1440_v30  ;;  %868 = vmatmul.bf16.vlgmr.msra.gmra.mxu2 %v2114_v54  ;;  %v1329_v30 = vld [vmem:[#allocation2 + $0x38] sm:$0xf0]  ;;  %v1604_v34 = vor.u32 %v1954_v27, %v1601_v28  ;;  %v2011_v27 = vld [vmem:[%s2261_s3 + $0x90] sm:$0xff] }
  0x5f   :  { %912 = vmatpush.bf16.msrb.mxu1 %v1428_v22  ;;  %925 = vmatpush.bf16.msrb.mxu2 %v1556_v23  ;;  %v1620_v22 = vor.u32 %v1958_v15, %v1617_v16  ;;  %v1982_v23 = vld [vmem:[#allocation2 + $0x32c] sm:$0xf]  ;;  %v1332_v37 = vor.u32 %v1886_v29, %v1329_v30 }
  0x60   :  { %1751 = vmatmul.msk.bf16.vlgmr.msra.gmra.mxu1 %vm739_vm1, %v2103_v33  ;;  %v2010_v30 = vld [vmem:[%s2261_s3 + $0x88] sm:$0xff] }
  0x61   :  { %881 = vmatmul.bf16.vlgmr.msra.gmra.mxu3 %v2121_v58  ;;  %892 = vmatpush.bf16.msra.mxu0 %v1584_v40  ;;  %v1585_v40 = vld [vmem:[#allocation2 + $0x238] sm:$0xf0] }
  0x62   :  { %938 = vmatpush.bf16.msrb.mxu3 %v1684_v9  ;;  %v1716_v9 = vor.u32 %v1982_v23, %v1713_v24  ;;  %v2012_v24 = vld [vmem:[%s2261_s3 + $0x98] sm:$0xff] }
  0x63   :  { %913 = vmatpush.bf16.msrb.mxu1 %v1412_v35  ;;  %926 = vmatpush.bf16.msrb.mxu2 %v1540_v36  ;;  %v1978_v35 = vld [vmem:[#allocation2 + $0x30c] sm:$0xf]  ;;  %v1697_v36 = vld [vmem:[#allocation2 + $0x318] sm:$0xf0] }
  0x64   :  { %v1700_v45 = vor.u32 %v1978_v35, %v1697_v36 }
  0x65   :  { %893 = vmatpush.bf16.msra.mxu0 %v1568_v53  ;;  %v1572_v53 = vor.u32 %v1946_v49, %v1569_v50  ;;  %v2019_v49 = vld [vmem:[%s2261_s3 + $0xd0] sm:$0xff] }
  0x66   :  { %939 = vmatpush.bf16.msrb.mxu3 %v1668_v46  ;;  %v1588_v46 = vor.u32 %v1950_v39, %v1585_v40 }
  0x67   :  { %914 = vmatpush.bf16.msrb.mxu1 %v1396_v47  ;;  %927 = vmatpush.bf16.msrb.mxu2 %v1524_v48  ;;  %v1316_v47 = vor.u32 %v1882_v41, %v1313_v42  ;;  %v1444_v48 = vor.u32 %v1914_v43, %v1441_v44  ;;  %v2022_v42 = vld [vmem:[%s2261_s3 + $0xe8] sm:$0xff] }
  0x68   :  { %894 = vmatmul.bf16.vlgmr.msra.gmra.mxu0 %v2119_v57 }
  0x69   :  { %954 = vmatpush.bf16.msrb.mxu0 %v754_v61  ;;  %v1993_v61 = vld [vmem:[%s2261_s3] sm:$0xff] }
  0x6a   :  { %940 = vmatpush.bf16.msrb.mxu3 %v1652_v60  ;;  %v2006_v60 = vld [vmem:[%s2261_s3 + $0x68] sm:$0xff] }
  0x6b   :  { %915 = vmatpush.bf16.msrb.mxu1 %v1380_v0  ;;  %928 = vmatpush.bf16.msrb.mxu2 %v1508_v1  ;;  %v2189_v0 = vld [vmem:[%s2260_s2] sm:$0xf] }
  0x6c   :  { %v161_v1 = vperm.slane %v2189_v0, 0 }
  0x6d   :  { %955 = vmatpush.bf16.msrb.mxu0 %v1748_v8 }
  0x6e   :  { %941 = vmatpush.bf16.msrb.mxu3 %v1636_v10  ;;  %v2016_v10 = vld [vmem:[%s2261_s3 + $0xb8] sm:$0xff] }
  0x6f   :  { %916 = vmatpush.bf16.msrb.mxu1 %v1364_v13  ;;  %929 = vmatpush.bf16.msrb.mxu2 %v1492_v14 }
  0x71   :  { %956 = vmatpush.bf16.msrb.mxu0 %v1732_v21 }
  0x72   :  { %942 = vmatpush.bf16.msrb.mxu3 %v1620_v22  ;;  %v2013_v22 = vld [vmem:[%s2261_s3 + $0xa0] sm:$0xff] }
  0x73   :  { %917 = vmatpush.bf16.msrb.mxu1 %v1348_v25  ;;  %930 = vmatpush.bf16.msrb.mxu2 %v1476_v26  ;;  %v162_v25 = vperm.slane %v2189_v0, 1 }
  0x75   :  { %957 = vmatpush.bf16.msrb.mxu0 %v1716_v9 }
  0x76   :  { %943 = vmatpush.bf16.msrb.mxu3 %v1604_v34  ;;  %v2024_v34 = vld [vmem:[%s2261_s3 + $0xf8] sm:$0xff] }
  0x77   :  { %918 = vmatpush.bf16.msrb.mxu1 %v1332_v37  ;;  %931 = vmatpush.bf16.msrb.mxu2 %v1460_v38  ;;  %v2009_v37 = vld [vmem:[%s2261_s3 + $0x80] sm:$0xff]  ;;  %v2023_v38 = vld [vmem:[%s2261_s3 + $0xf0] sm:$0xff] }
  0x79   :  { %958 = vmatpush.bf16.msrb.mxu0 %v1700_v45 }
  0x7a   :  { %944 = vmatpush.bf16.msrb.mxu3 %v1588_v46  ;;  %v2021_v46 = vld [vmem:[%s2261_s3 + $0xe0] sm:$0xff] }
  0x7b   :  { %919 = vmatpush.bf16.msrb.mxu1 %v1316_v47  ;;  %932 = vmatpush.bf16.msrb.mxu2 %v1444_v48  ;;  %v163_v48 = vperm.slane %v2189_v0, 2 }
  0x7c   :  { %1752 = vmatmul.msk.bf16.vlgmr.msrb.gmra.mxu0 %vm739_vm1, %v2103_v33  ;;  %v1996_v33 = vld [vmem:[%s2261_s3 + $0x18] sm:$0xff] }
  0x7d   :  { %1232 = vmatpush.bf16.msra.mxu0 %v2000_v52  ;;  %v2020_v52 = vld [vmem:[%s2261_s3 + $0xd8] sm:$0xff] }
  0x7e   :  { %920 = vmatmul.bf16.vlgmr.msrb.gmra.mxu1 %v2114_v54  ;;  %933 = vmatmul.bf16.vlgmr.msrb.gmra.mxu2 %v2121_v58  ;;  %v1995_v54 = vld [vmem:[%s2261_s3 + $0x10] sm:$0xff] }
  0x7f   :  { %1245 = vmatpush.bf16.msra.mxu1 %v2008_v51  ;;  %945 = vmatpush.bf16.msrb.mxu3 %v1572_v53  ;;  %v2007_v58 = vld [vmem:[%s2261_s3 + $0x70] sm:$0xff]  ;;  %v2018_v53 = vld [vmem:[%s2261_s3 + $0xc8] sm:$0xff] }
  0x80   :  { %1258 = vmatpush.bf16.msra.mxu2 %v2016_v10 }
  0x81   :  { %1233 = vmatpush.bf16.msra.mxu0 %v1999_v55 }
  0x82   :  { %946 = vmatmul.bf16.vlgmr.msrb.gmra.mxu3 %v2119_v57  ;;  %v1994_v57 = vld [vmem:[%s2261_s3 + $0x8] sm:$0xff] }
  0x83   :  { %1246 = vmatpush.bf16.msra.mxu1 %v2007_v58  ;;  %1271 = vmatpush.bf16.msra.mxu3 %v2024_v34 }
  0x84   :  { %1259 = vmatpush.bf16.msra.mxu2 %v2015_v17 }
  0x85   :  { %1234 = vmatpush.bf16.msra.mxu0 %v1998_v56 }
  0x87   :  { %1247 = vmatpush.bf16.msra.mxu1 %v2006_v60  ;;  %1272 = vmatpush.bf16.msra.mxu3 %v2023_v38 }
  0x88   :  { %1260 = vmatpush.bf16.msra.mxu2 %v2014_v19 }
  0x89   :  { %1235 = vmatpush.bf16.msra.mxu0 %v1997_v59 }
  0x8b   :  { %1248 = vmatpush.bf16.msra.mxu1 %v2005_v62  ;;  %1273 = vmatpush.bf16.msra.mxu3 %v2022_v42 }
  0x8c   :  { %1261 = vmatpush.bf16.msra.mxu2 %v2013_v22 }
  0x8d   :  { %1236 = vmatpush.bf16.msra.mxu0 %v1996_v33 }
  0x8f   :  { %1249 = vmatpush.bf16.msra.mxu1 %v2004_v63  ;;  %1274 = vmatpush.bf16.msra.mxu3 %v2021_v46 }
  0x90   :  { %1262 = vmatpush.bf16.msra.mxu2 %v2012_v24 }
  0x91   :  { %1237 = vmatpush.bf16.msra.mxu0 %v1995_v54  ;;  %v2017_v54 = vld [vmem:[%s2261_s3 + $0xc0] sm:$0xff] }
  0x93   :  { %1250 = vmatpush.bf16.msra.mxu1 %v2003_v2  ;;  %1275 = vmatpush.bf16.msra.mxu3 %v2020_v52 }
  0x94   :  { %1263 = vmatpush.bf16.msra.mxu2 %v2011_v27 }
  0x95   :  { %1238 = vmatpush.bf16.msra.mxu0 %v1994_v57 }
  0x97   :  { %1251 = vmatpush.bf16.msra.mxu1 %v2002_v7  ;;  %1276 = vmatpush.bf16.msra.mxu3 %v2019_v49 }
  0x98   :  { %1264 = vmatpush.bf16.msra.mxu2 %v2010_v30 }
  0x99   :  { %1239 = vmatpush.bf16.msra.mxu0 %v1993_v61 }
  0x9b   :  { %1252 = vmatpush.bf16.msra.mxu1 %v2001_v11  ;;  %1277 = vmatpush.bf16.msra.mxu3 %v2018_v53 }
  0x9c   :  { %1265 = vmatpush.bf16.msra.mxu2 %v2009_v37 }
  0x9f   :  { %1278 = vmatpush.bf16.msra.mxu3 %v2017_v54 }
  0xa4   :  { %v804_v3 = vpop.f32.mrf.mxu3 }
  0xa5   :  { %v765_v4 = vpop.f32.mrf.mxu0 }
  0xa6   :  { %v778_v5 = vpop.f32.mrf.mxu1  ;;  %v766_v6 = vadd.f32 %v765_v4, %v161_v1 }
  0xa8   :  { %v779_v8 = vadd.f32 %v778_v5, %v766_v6 }
  0xac   :  { %v806_v13 = vpop.f32.mrf.mxu3 }
  0xad   :  { %v767_v15 = vpop.f32.mrf.mxu0 }
  0xae   :  { %v780_v16 = vpop.f32.mrf.mxu1 }
  0xaf   :  { %v791_v12 = vpop.f32.mrf.mxu2 }
  0xb0   :  { %v792_v14 = vadd.f32 %v791_v12, %v779_v8 }
  0xb2   :  { %v805_v18 = vadd.f32 %v804_v3, %v792_v14  ;;  %v164_v3 = vperm.slane %v2189_v0, 3 }
  0xb4   :  { %v964_v20 = vmax.f32 %v805_v18, 0.0 }
  0xb6   :  { %v968_v21 = vpack.c.bf16 %v964_v20, %v964_v20 }
  0xb7   :  { %v793_v23 = vpop.f32.mrf.mxu2 }
  0xb8   :  { %1240 = vmatmul.bf16.vlgmr.msra.gmra.mxu0 %v968_v21  ;;  %v2028_v23 = vld [vmem:[%s2262_s4] ss:$0 sm:$0xff] }
  0xc1   :  { %v856_v26 = vpop.f32.mrf.mxu2 }
  0xc4   :  { %v817_v28 = vpop.f32.mrf.mxu3 }
  0xc5   :  { %v818_v29 = vadd.f32 %v817_v28, %v162_v25  ;;  %v830_v31 = vpop.f32.mrf.mxu0 }
  0xc7   :  { %v831_v32 = vadd.f32 %v830_v31, %v818_v29  ;;  %v843_v9 = vpop.f32.mrf.mxu1 }
  0xc9   :  { %v844_v35 = vadd.f32 %v843_v9, %v831_v32  ;;  %v858_v36 = vpop.f32.mrf.mxu2 }
  0xcb   :  { %v857_v39 = vadd.f32 %v856_v26, %v844_v35 }
  0xcc   :  { %v819_v40 = vpop.f32.mrf.mxu3 }
  0xcd   :  { %v965_v41 = vmax.f32 %v857_v39, 0.0  ;;  %v832_v43 = vpop.f32.mrf.mxu0 }
  0xcf   :  { %v969_v44 = vpack.c.bf16 %v965_v41, %v965_v41  ;;  %v845_v45 = vpop.f32.mrf.mxu1 }
  0xd1   :  { %1253 = vmatmul.bf16.vlgmr.msra.gmra.mxu1 %v969_v44 }
  0xdd   :  { %v908_v47 = vpop.f32.mrf.mxu1 }
  0xe1   :  { %v869_v50 = vpop.f32.mrf.mxu2 }
  0xe2   :  { %v870_v51 = vadd.f32 %v869_v50, %v163_v48 }
  0xe4   :  { %v882_v55 = vpop.f32.mrf.mxu3 }
  0xe5   :  { %v910_v56 = vpop.f32.mrf.mxu1  ;;  %v883_v59 = vadd.f32 %v882_v55, %v870_v51  ;;  %v895_v33 = vpop.f32.mrf.mxu0 }
  0xe7   :  { %v896_v58 = vadd.f32 %v895_v33, %v883_v59 }
  0xe9   :  { %v909_v57 = vadd.f32 %v908_v47, %v896_v58  ;;  %v871_v60 = vpop.f32.mrf.mxu2 }
  0xeb   :  { %v966_v61 = vmax.f32 %v909_v57, 0.0 }
  0xec   :  { %v884_v62 = vpop.f32.mrf.mxu3 }
  0xed   :  { %v970_v63 = vpack.c.bf16 %v966_v61, %v966_v61  ;;  %v897_v1 = vpop.f32.mrf.mxu0 }
  0xef   :  { %1266 = vmatmul.bf16.vlgmr.msra.gmra.mxu2 %v970_v63 }
  0xf9   :  { %v960_v2 = vpop.f32.mrf.mxu0 }
  0xfb   :  { %v921_v4 = vpop.f32.mrf.mxu1 }
  0xfc   :  { %v922_v5 = vadd.f32 %v921_v4, %v164_v3 }
 0x101   :  { %v934_v6 = vpop.f32.mrf.mxu2  ;;  %v962_v7 = vpop.f32.mrf.mxu0 }
 0x102   :  { %v935_v8 = vadd.f32 %v934_v6, %v922_v5 }
 0x103   :  { %v923_v10 = vpop.f32.mrf.mxu1 }
 0x105   :  { %v947_v11 = vpop.f32.mrf.mxu3 }
 0x106   :  { %v948_v12 = vadd.f32 %v947_v11, %v935_v8 }
 0x108   :  { %v961_v13 = vadd.f32 %v960_v2, %v948_v12 }
 0x109   :  { %v936_v14 = vpop.f32.mrf.mxu2 }
 0x10a   :  { %v967_v15 = vmax.f32 %v961_v13, 0.0 }
 0x10c   :  { %v971_v16 = vpack.c.bf16 %v967_v15, %v967_v15 }
 0x10d   :  { %v949_v17 = vpop.f32.mrf.mxu3 }
 0x10e   :  { %1279 = vmatmul.bf16.vlgmr.msra.gmra.mxu3 %v971_v16 }
 0x135   :  { %v1241_v18 = vpop.f32.mrf.mxu0 }
 0x136   :  { %v1242_v24 = vadd.f32 %v2028_v23, %v1241_v18 }
 0x13d   :  { %v1243_v19 = vpop.f32.mrf.mxu0 }
 0x14e   :  { %v1254_v20 = vpop.f32.mrf.mxu1 }
 0x14f   :  { %v1255_v25 = vadd.f32 %v1254_v20, %v1242_v24 }
 0x156   :  { %v1256_v21 = vpop.f32.mrf.mxu1 }
 0x172   :  { %v1267_v22 = vpop.f32.mrf.mxu2 }
 0x173   :  { %v1268_v26 = vadd.f32 %v1267_v22, %v1255_v25 }
 0x17a   :  { %v1269_v0 = vpop.f32.mrf.mxu2 }
 0x191   :  { %v1280_v27 = vpop.f32.mrf.mxu3 }
 0x192   :  { %v1281_v28 = vadd.f32 %v1280_v27, %v1268_v26 }
 0x194   :  { %1284 = vmax.xlane.f32.xlu0 %v1281_v28 }
 0x199   :  { %v1282_v29 = vpop.f32.mrf.mxu3 }
 0x207   :  { %v1285_v30 = vpop.xlane.xlu0 %1284 }
 0x208   :  { %v1286_v31 = vsub.f32 %v1281_v28, %v1285_v30 }
 0x20a   :  { %v1287_v32 = vmul.f32 1.442695, %v1286_v31 }
 0x20c   :  { %2029 = vpow2.f32 %v1287_v32 }
 0x212   :  { %v2030_v9 = vpop.eup %2029 }
 0x213   :  { %1289 = vadd.xlane.f32.xlu0 %v2030_v9 }
 0x286   :  { %v1290_v34 = vpop.xlane.xlu0 %1289 }
 0x287   :  { %2031 = vlog2.f32 %v1290_v34 }
 0x28d   :  { %v2032_v35 = vpop.eup %2031 }
 0x28e   :  { %v1292_v36 = vmul.f32 0.6931472, %v2032_v35 }
 0x290   :  { %v1293_v37 = vsub.f32 %v1286_v31, %v1292_v36 }
 0x292   :  { %1295 = vst.msk [vmem:[%s2263_s5] sm:$0xff] %vm1294_vm2, %v1293_v37 }
 0x293   :  { %1300 = vsyncpa [#allocation3], 1 }

</bundles_post_ra>
